<compile_context>
chip_gen: v5e
topology: v5e:2x2
jax: 0.10.0
libtpu: 0.0.40
codegen_flags: <defaults>
</compile_context>

<pallas_src>
import jax
import jax.numpy as jnp
from jax.experimental import pallas as pl
from jax.experimental.pallas import tpu as pltpu


def _round_up(x, m):
    return (x + m - 1) // m * m


def _cdiv(a, b):
    return -(-a // b)


def mlp_kernel(u_ref, i_ref, w1u_ref, w1i_ref, b1_ref, w3_ref, b3_ref, o_ref):
    # Towers + fc2 folded into one matmul per input stream (see fuse_params).
    # Inputs stream as f32 straight from HBM; cast to bf16 in-register for the MXU.
    u = u_ref[...].astype(jnp.bfloat16)
    it = i_ref[...].astype(jnp.bfloat16)
    h = jnp.dot(u, w1u_ref[...], preferred_element_type=jnp.float32)
    h = h + jnp.dot(it, w1i_ref[...], preferred_element_type=jnp.float32)
    h = jnp.maximum(h + b1_ref[...], 0.0)                 # relu2, (TILE_B, H1) f32
    # dropout2(p=0.2): identity at inference time.

    # fc3 as a bf16 NT matmul against the 8-row-padded w3 (row 0 holds the real
    # weights): contracting the H1 dim of both operands puts the batch on lanes, so
    # the logits come out lane-major and the output store is a dense (1, TILE_B) row.
    scores = jax.lax.dot_general(
        w3_ref[...], h.astype(jnp.bfloat16),
        dimension_numbers=(((1,), (1,)), ((), ())),
        preferred_element_type=jnp.float32)               # (8, TILE_B)
    logits = scores[0:1, :] + b3_ref[...]                 # (1, TILE_B)

    # sigmoid (exp rides the EUP slot; exact divide is 1 value per row -> free).
    o_ref[...] = pl.reciprocal(1.0 + jnp.exp(-logits), approx=False)


def fuse_params(params):
    """Fold user_fc/item_fc into fc2 (no nonlinearity in between -> exact algebra)."""
    wu, bu, wi, bi, w2u, w2i, b2, w3, b3 = params
    w1u = (wu @ w2u).astype(jnp.bfloat16)                 # (Fu, H1)
    w1i = (wi @ w2i).astype(jnp.bfloat16)                 # (Fi, H1)
    b1f = (bu @ w2u + bi @ w2i + b2).astype(jnp.float32)  # (1, H1)
    H1 = w3.shape[0]
    # Pad w3 (H1,1) to an 8-row (8, H1) operand (row 0 = real weights) so the fc3
    # NT matmul has an MXU-friendly sublane extent; bf16 for a single-pass matmul.
    w3p = jnp.zeros((8, H1), jnp.float32).at[0, :].set(w3[:, 0]).astype(jnp.bfloat16)
    return w1u, w1i, b1f, w3p, b3.astype(jnp.float32)


def mlp_forward(user, item, params, *, max_tile_b=8192):
    """user: (B, Fu), item: (B, Fi) float32. Returns (B,) float32 (scalar if B==1)."""
    B, Fu = user.shape
    _, Fi = item.shape
    w1u, w1i, b1f, w3p, b3 = fuse_params(params)
    H1 = w1u.shape[1]

    def lane(n):
        return _round_up(max(int(n), 1), 128)

    # --- batch tiling --------------------------------------------------------
    # Cap tile_b so the double-buffered, 128-lane-padded f32 input blocks plus the
    # output blocks fit a VMEM budget that is safe on every generation (v7x physical
    # VMEM is only 64 MiB; v5e's 16 MiB scoped default is raised below to 32 MiB).
    vmem_budget = 28 << 20
    row_bytes = 2 * (lane(Fu) + lane(Fi)) * 4 + 2 * 4     # dbl-buffered inputs + out
    tile_cap = max(256, (vmem_budget // row_bytes) // 256 * 256)
    max_tile_b = max(256, min(_round_up(max_tile_b, 256), tile_cap))

    # >= 2 tiles when the batch is big enough so the "parallel" axis can actually be
    # sharded across v7x's two TensorCores (one extra ~0.35us step on 1-TC chips).
    min_tiles = 2 if B >= 512 else 1
    num_tiles = max(min_tiles, _cdiv(B, max_tile_b))
    tile_b = min(max_tile_b, _round_up(_cdiv(B, num_tiles), 256))   # balanced tiles
    b_pad = _round_up(B, tile_b)
    num_tiles = b_pad // tile_b

    if b_pad != B:
        user = jnp.pad(user, ((0, b_pad - B), (0, 0)))
        item = jnp.pad(item, ((0, b_pad - B), (0, 0)))

    cost = pl.CostEstimate(
        flops=int(2 * b_pad * (Fu + Fi) * H1 + 2 * b_pad * 8 * H1),
        transcendentals=int(b_pad),
        bytes_accessed=int(b_pad * (Fu + Fi) * 4 + b_pad * 4
                           + (w1u.size + w1i.size + w3p.size) * 2
                           + b1f.size * 4 + 4),
    )

    out = pl.pallas_call(
        mlp_kernel,
        out_shape=jax.ShapeDtypeStruct((1, b_pad), jnp.float32),
        grid=(num_tiles,),
        in_specs=[
            pl.BlockSpec((tile_b, Fu), lambda i: (i, 0)),   # streamed user features
            pl.BlockSpec((tile_b, Fi), lambda i: (i, 0)),   # streamed item features
            pl.BlockSpec((Fu, H1), lambda i: (0, 0)),       # fused user-tower weight
            pl.BlockSpec((Fi, H1), lambda i: (0, 0)),       # fused item-tower weight
            pl.BlockSpec((1, H1), lambda i: (0, 0)),        # fused bias
            pl.BlockSpec((8, H1), lambda i: (0, 0)),        # padded fc3 weight
            pl.BlockSpec((1, 1), lambda i: (0, 0)),         # fc3 bias
        ],
        out_specs=pl.BlockSpec((1, tile_b), lambda i: (0, i)),  # lane-dense logits
        compiler_params=pltpu.CompilerParams(
            dimension_semantics=("parallel",),
            vmem_limit_bytes=32 * 1024 * 1024),
        cost_estimate=cost,
    )(user.astype(jnp.float32), item.astype(jnp.float32),
      w1u, w1i, b1f, w3p, b3)

    return out.reshape(-1)[:B].squeeze()   # matches torch .squeeze()


def init_params(key, num_user_features, num_item_features, hidden_dims=(128, 64)):
    """Synthetic parameters matching the nn.Linear shapes (stored transposed: (in, out))."""
    H0, H1 = hidden_dims
    ks = jax.random.split(key, 8)
    wu = jax.random.normal(ks[0], (num_user_features, H0), jnp.float32) * 0.05
    bu = jax.random.normal(ks[1], (1, H0), jnp.float32) * 0.05
    wi = jax.random.normal(ks[2], (num_item_features, H0), jnp.float32) * 0.05
    bi = jax.random.normal(ks[3], (1, H0), jnp.float32) * 0.05
    w2 = jax.random.normal(ks[4], (2 * H0, H1), jnp.float32) * 0.05
    b2 = jax.random.normal(ks[5], (1, H1), jnp.float32) * 0.05
    w3 = jax.random.normal(ks[6], (H1, 1), jnp.float32) * 0.05
    b3 = jax.random.normal(ks[7], (1, 1), jnp.float32) * 0.05
    w2u, w2i = w2[:H0], w2[H0:]
    return (wu, bu, wi, bi, w2u, w2i, b2, w3, b3)


if __name__ == "__main__":
    key = jax.random.PRNGKey(0)
    B, Fu, Fi = 8, 16, 24
    hidden_dims = (128, 64)

    kp, ku, ki = jax.random.split(key, 3)
    params = init_params(kp, Fu, Fi, hidden_dims)
    user = jax.random.normal(ku, (B, Fu), jnp.float32)
    item = jax.random.normal(ki, (B, Fi), jnp.float32)

    out = mlp_forward(user, item, params)
    jax.block_until_ready(out)

    # Pure-JAX reference following the ORIGINAL (unfused, f32) PyTorch forward.
    wu, bu, wi, bi, w2u, w2i, b2, w3, b3 = params
    u_e = user @ wu + bu
    i_e = item @ wi + bi
    h = jnp.maximum(
        jnp.concatenate([u_e, i_e], axis=1)
        @ jnp.concatenate([w2u, w2i], axis=0) + b2, 0.0)
    ref = jax.nn.sigmoid(h @ w3 + b3).squeeze()

    assert out.shape == (B,), out.shape
    # bf16 weight fusion / bf16 fc3 operands -> compare at bf16-level tolerance.
    assert jnp.allclose(out, ref, atol=2e-2), (out, ref)

    print("KERNEL_OK")
</pallas_src>

<mosaic_0001>
module attributes {stable_mosaic.version = 11 : i64} {
  func.func @mlp_kernel(%arg0: i32, %arg1: memref<256x16xf32, #tpu.memory_space<vmem>>, %arg2: memref<256x24xf32, #tpu.memory_space<vmem>>, %arg3: memref<16x64xbf16, #tpu.memory_space<vmem>>, %arg4: memref<24x64xbf16, #tpu.memory_space<vmem>>, %arg5: memref<1x64xf32, #tpu.memory_space<vmem>>, %arg6: memref<8x64xbf16, #tpu.memory_space<vmem>>, %arg7: memref<1x1xf32, #tpu.memory_space<vmem>>, %arg8: memref<1x256xf32, #tpu.memory_space<vmem>>) attributes {dimension_semantics = [#tpu.dimension_semantics<parallel>], iteration_bounds = array<i64: 1>, scalar_prefetch = 0 : i64, scratch_operands = 0 : i64, tpu.core_type = #tpu.core_type<tc>, window_params = [{transform_indices = @transform_0, window_bounds = array<i64: 256, 16>}, {transform_indices = @transform_1, window_bounds = array<i64: 256, 24>}, {pipeline_mode = #tpu.pipeline_mode<synchronous>, transform_indices = @transform_2, window_bounds = array<i64: 16, 64>}, {pipeline_mode = #tpu.pipeline_mode<synchronous>, transform_indices = @transform_3, window_bounds = array<i64: 24, 64>}, {pipeline_mode = #tpu.pipeline_mode<synchronous>, transform_indices = @transform_4, window_bounds = array<i64: 1, 64>}, {pipeline_mode = #tpu.pipeline_mode<synchronous>, transform_indices = @transform_5, window_bounds = array<i64: 8, 64>}, {pipeline_mode = #tpu.pipeline_mode<synchronous>, transform_indices = @transform_6, window_bounds = array<i64: 1, 1>}, {transform_indices = @transform_7, window_bounds = array<i64: 1, 256>}]} {
    %c0 = arith.constant 0 : index
    %c0_0 = arith.constant 0 : index
    %0 = vector.load %arg1[%c0, %c0_0] : memref<256x16xf32, #tpu.memory_space<vmem>>, vector<256x16xf32>
    %1 = arith.truncf %0 : vector<256x16xf32> to vector<256x16xbf16>
    %c0_1 = arith.constant 0 : index
    %c0_2 = arith.constant 0 : index
    %2 = vector.load %arg2[%c0_1, %c0_2] : memref<256x24xf32, #tpu.memory_space<vmem>>, vector<256x24xf32>
    %3 = arith.truncf %2 : vector<256x24xf32> to vector<256x24xbf16>
    %c0_3 = arith.constant 0 : index
    %c0_4 = arith.constant 0 : index
    %4 = vector.load %arg3[%c0_3, %c0_4] : memref<16x64xbf16, #tpu.memory_space<vmem>>, vector<16x64xbf16>
    %cst = arith.constant dense<0.000000e+00> : vector<256x64xf32>
    %5 = tpu.matmul %1, %4, %cst {dimension_numbers = #tpu.dot_dimension_numbers<[1], [0], [0], [1], [0, 0, 1, 1], [], []>} : vector<256x16xbf16>, vector<16x64xbf16>, vector<256x64xf32> -> vector<256x64xf32>
    %c0_5 = arith.constant 0 : index
    %c0_6 = arith.constant 0 : index
    %6 = vector.load %arg4[%c0_5, %c0_6] : memref<24x64xbf16, #tpu.memory_space<vmem>>, vector<24x64xbf16>
    %cst_7 = arith.constant dense<0.000000e+00> : vector<256x64xf32>
    %7 = tpu.matmul %3, %6, %cst_7 {dimension_numbers = #tpu.dot_dimension_numbers<[1], [0], [0], [1], [0, 0, 1, 1], [], []>} : vector<256x24xbf16>, vector<24x64xbf16>, vector<256x64xf32> -> vector<256x64xf32>
    %8 = arith.addf %5, %7 : vector<256x64xf32>
    %c0_8 = arith.constant 0 : index
    %c0_9 = arith.constant 0 : index
    %9 = vector.load %arg5[%c0_8, %c0_9] : memref<1x64xf32, #tpu.memory_space<vmem>>, vector<1x64xf32>
    %10 = vector.broadcast %9 : vector<1x64xf32> to vector<256x64xf32>
    %11 = arith.addf %8, %10 : vector<256x64xf32>
    %cst_10 = arith.constant 0.000000e+00 : f32
    %12 = vector.broadcast %cst_10 : f32 to vector<256x64xf32>
    %13 = arith.maximumf %11, %12 : vector<256x64xf32>
    %c0_11 = arith.constant 0 : index
    %c0_12 = arith.constant 0 : index
    %14 = vector.load %arg6[%c0_11, %c0_12] : memref<8x64xbf16, #tpu.memory_space<vmem>>, vector<8x64xbf16>
    %15 = arith.truncf %13 : vector<256x64xf32> to vector<256x64xbf16>
    %cst_13 = arith.constant dense<0.000000e+00> : vector<8x256xf32>
    %16 = tpu.matmul %14, %15, %cst_13 {dimension_numbers = #tpu.dot_dimension_numbers<[1], [1], [0], [0], [0, 0, 1, 0], [], []>} : vector<8x64xbf16>, vector<256x64xbf16>, vector<8x256xf32> -> vector<8x256xf32>
    %17 = vector.extract_strided_slice %16 {offsets = [0, 0], sizes = [1, 256], strides = [1, 1]} : vector<8x256xf32> to vector<1x256xf32>
    %c0_14 = arith.constant 0 : index
    %c0_15 = arith.constant 0 : index
    %18 = vector.load %arg7[%c0_14, %c0_15] : memref<1x1xf32, #tpu.memory_space<vmem>>, vector<1x1xf32>
    %19 = vector.broadcast %18 : vector<1x1xf32> to vector<1x256xf32>
    %20 = arith.addf %17, %19 : vector<1x256xf32>
    %cst_16 = arith.constant 0.000000e+00 : f32
    %21 = vector.broadcast %cst_16 : f32 to vector<1x256xf32>
    %22 = arith.subf %21, %20 : vector<1x256xf32>
    %23 = math.exp %22 : vector<1x256xf32>
    %cst_17 = arith.constant 1.000000e+00 : f32
    %24 = vector.broadcast %cst_17 : f32 to vector<1x256xf32>
    %25 = arith.addf %24, %23 : vector<1x256xf32>
    %26 = tpu.reciprocal %25 : vector<1x256xf32> -> vector<1x256xf32>
    %c0_18 = arith.constant 0 : index
    %c0_19 = arith.constant 0 : index
    %27 = vector.load %arg8[%c0_18, %c0_19] : memref<1x256xf32, #tpu.memory_space<vmem>>, vector<1x256xf32>
    tpu.vector_store %arg8[%c0_18, %c0_19], %26 {strides = array<i32>} : memref<1x256xf32, #tpu.memory_space<vmem>>, vector<1x256xf32>,
    return
  }
  func.func @transform_0(%arg0: i32) -> (i32, i32) {
    %c0_i32 = arith.constant 0 : i32
    %c0_i32_0 = arith.constant 0 : i32
    return %arg0, %c0_i32 : i32, i32
  }
  func.func @transform_1(%arg0: i32) -> (i32, i32) {
    %c0_i32 = arith.constant 0 : i32
    %c0_i32_0 = arith.constant 0 : i32
    return %arg0, %c0_i32 : i32, i32
  }
  func.func @transform_2(%arg0: i32) -> (i32, i32) {
    %c0_i32 = arith.constant 0 : i32
    %c0_i32_0 = arith.constant 0 : i32
    %c0_i32_1 = arith.constant 0 : i32
    return %c0_i32, %c0_i32_0 : i32, i32
  }
  func.func @transform_3(%arg0: i32) -> (i32, i32) {
    %c0_i32 = arith.constant 0 : i32
    %c0_i32_0 = arith.constant 0 : i32
    %c0_i32_1 = arith.constant 0 : i32
    return %c0_i32, %c0_i32_0 : i32, i32
  }
  func.func @transform_4(%arg0: i32) -> (i32, i32) {
    %c0_i32 = arith.constant 0 : i32
    %c0_i32_0 = arith.constant 0 : i32
    %c0_i32_1 = arith.constant 0 : i32
    return %c0_i32, %c0_i32_0 : i32, i32
  }
  func.func @transform_5(%arg0: i32) -> (i32, i32) {
    %c0_i32 = arith.constant 0 : i32
    %c0_i32_0 = arith.constant 0 : i32
    %c0_i32_1 = arith.constant 0 : i32
    return %c0_i32, %c0_i32_0 : i32, i32
  }
  func.func @transform_6(%arg0: i32) -> (i32, i32) {
    %c0_i32 = arith.constant 0 : i32
    %c0_i32_0 = arith.constant 0 : i32
    %c0_i32_1 = arith.constant 0 : i32
    return %c0_i32, %c0_i32_0 : i32, i32
  }
  func.func @transform_7(%arg0: i32) -> (i32, i32) {
    %c0_i32 = arith.constant 0 : i32
    %c0_i32_0 = arith.constant 0 : i32
    return %c0_i32, %arg0 : i32, i32
  }
}

</mosaic_0001>

<bundles_post_ra>
// kernel: tpu_custom_call.1
= control target key start
LH: loop header
LB: loop body
LE: loop exit
PB: predicated region body
PF: predicated region fallthrough
CT: control target
= control target key end

     0   :  { %s1118_s0 = inlined_call_operand.vmem [shape: f32[256,16], index: 0, kind: input, shape index: {}]   ;;  %s1119_s1 = inlined_call_operand.vmem [shape: f32[256,24], index: 1, kind: input, shape index: {}]   ;;  %s1120_s2 = inlined_call_operand.vmem [shape: bf16[16,64], index: 2, kind: input, shape index: {}]   ;;  %s1121_s3 = inlined_call_operand.vmem [shape: bf16[24,64], index: 3, kind: input, shape index: {}]   ;;  %s1122_s4 = inlined_call_operand.vmem [shape: f32[1,64], index: 4, kind: input, shape index: {}]   ;;  %s1123_s5 = inlined_call_operand.vmem [shape: bf16[8,64], index: 5, kind: input, shape index: {}]   ;;  %s1124_s6 = inlined_call_operand.<no memory space> [shape: f32[1,1], index: 6, kind: input, shape index: {}]   ;;  %s1125_s7 = inlined_call_operand.hbm [shape: f32[1,256], index: 7, kind: output, shape index: {}]  }
   0x1   :  { %v12_v0 = vstv %s1124_s6 }
   0x2   :  { %13 = vst [vmem:[#allocation2] sm:$0x1] %v12_v0 }
   0x3   :  { %v703_v1 = vld [vmem:[%s1120_s2] sm:$0xff]  ;;  %v130_v2 = vld [vmem:[%s1121_s3 + $0x8] sm:$0xf]  ;;  %v48_v6 = vld [vmem:[%s1118_s0 + $0x90] sm:$0xff]  ;;  %vm189_vm0 = vcmask 1043456   ;;  %vm288_vm1 = vcmask 130048  }
   0x4   :  { %v30_v3 = vld [vmem:[%s1118_s0] sm:$0xff]  ;;  %v136_v4 = vunpack.c.l.b16 %v130_v2  ;;  %v31_v5 = vld [vmem:[%s1118_s0 + $0x8] sm:$0xff]  ;;  %v49_v7 = vld [vmem:[%s1118_s0 + $0x98] sm:$0xff]  ;;  %344 = vmatpush.bf16.msra.mxu1 %v703_v1  ;;  %707 = vmatpush.bf16.msra.mxu3 %v703_v1 }
   0x5   :  { %v62_v8 = vpack.c.bf16 %v31_v5, %v30_v3  ;;  %v71_v9 = vpack.c.bf16 %v49_v7, %v48_v6  ;;  %v704_v12 = vld [vmem:[%s1121_s3] sm:$0xff]  ;;  %v79_v14 = vld [vmem:[%s1119_s1 + $0x8] sm:$0xff] }
   0x6   :  { %v138_v10 = vpack.c.b16 %v136_v4, %v136_v4  ;;  %v78_v13 = vld [vmem:[%s1119_s1] sm:$0xff]  ;;  %v99_v16 = vld [vmem:[%s1119_s1 + $0xa8] sm:$0xff] }
   0x7   :  { %685 = vmatmul.msk.bf16.vlgmr.msra.gmra.mxu1 %vm288_vm1, %v62_v8  ;;  %694 = vmatmul.msk.bf16.vlgmr.msra.gmra.mxu3 %vm288_vm1, %v71_v9  ;;  %v98_v15 = vld [vmem:[%s1119_s1 + $0xa0] sm:$0xff] }
   0x8   :  { %v191_v11 = vsel %vm189_vm0, %v138_v10, 0 }
   0x9   :  { %199 = vmatpush.bf16.msra.mxu0 %v191_v11  ;;  %705 = vmatpush.bf16.msra.mxu2 %v191_v11 }
   0xa   :  { %14 = vsyncpa [#allocation4], 0  ;;  %v110_v17 = vpack.c.bf16 %v79_v14, %v78_v13  ;;  %v120_v18 = vpack.c.bf16 %v99_v16, %v98_v15  ;;  %vm140_vm2 = vcmask 195584   ;;  %v32_v19 = vld [vmem:[%s1118_s0 + $0x10] sm:$0xff]  ;;  %v33_v20 = vld [vmem:[%s1118_s0 + $0x18] sm:$0xff]  ;;  %vm511_vm3 = vcmask 523264  }
   0xb   :  { %v50_v21 = vld [vmem:[%s1118_s0 + $0xa0] sm:$0xff]  ;;  %v51_v22 = vld [vmem:[%s1118_s0 + $0xa8] sm:$0xff]  ;;  %v63_v23 = vpack.c.bf16 %v33_v20, %v32_v19  ;;  %v80_v25 = vld [vmem:[%s1119_s1 + $0x10] sm:$0xff]  ;;  %s652_s11 = sshll.u32 %s1125_s7, 4  ;;  %vm637_vm11 = vcmask 1040384   ;;  %s653_s11 = int_to_ptr.hbm [resolvable:$true] %s652_s11 }
   0xc   :  { %v72_v24 = vpack.c.bf16 %v51_v22, %v50_v21  ;;  %v81_v26 = vld [vmem:[%s1119_s1 + $0x18] sm:$0xff]  ;;  %v100_v27 = vld [vmem:[%s1119_s1 + $0xb0] sm:$0xff]  ;;  %v34_v31 = vld [vmem:[%s1118_s0 + $0x20] sm:$0xff] }
   0xd   :  { %200 = vmatpush.bf16.msra.mxu0 %v704_v12  ;;  %706 = vmatpush.bf16.msra.mxu2 %v704_v12  ;;  %v101_v28 = vld [vmem:[%s1119_s1 + $0xb8] sm:$0xff]  ;;  %v111_v29 = vpack.c.bf16 %v81_v26, %v80_v25  ;;  %v35_v32 = vld [vmem:[%s1118_s0 + $0x28] sm:$0xff]  ;;  %v52_v33 = vld [vmem:[%s1118_s0 + $0xb0] sm:$0xff] }
   0xe   :  { %v121_v30 = vpack.c.bf16 %v101_v28, %v100_v27  ;;  %v53_v34 = vld [vmem:[%s1118_s0 + $0xb8] sm:$0xff]  ;;  %v64_v35 = vpack.c.bf16 %v35_v32, %v34_v31  ;;  %v82_v37 = vld [vmem:[%s1119_s1 + $0x20] sm:$0xff]  ;;  %v83_v38 = vld [vmem:[%s1119_s1 + $0x28] sm:$0xff] }
   0xf   :  { %v73_v36 = vpack.c.bf16 %v53_v34, %v52_v33  ;;  %v102_v39 = vld [vmem:[%s1119_s1 + $0xc0] sm:$0xff]  ;;  %v103_v40 = vld [vmem:[%s1119_s1 + $0xc8] sm:$0xff]  ;;  %v112_v41 = vpack.c.bf16 %v83_v38, %v82_v37  ;;  %v36_v43 = vld [vmem:[%s1118_s0 + $0x30] sm:$0xff] }
  0x10   :  { %665 = vmatmul.msk.bf16.vlgmr.msra.gmra.mxu0 %vm140_vm2, %v110_v17  ;;  %675 = vmatmul.msk.bf16.vlgmr.msra.gmra.mxu2 %vm140_vm2, %v120_v18  ;;  %v122_v42 = vpack.c.bf16 %v103_v40, %v102_v39  ;;  %v37_v44 = vld [vmem:[%s1118_s0 + $0x38] sm:$0xff]  ;;  %v54_v45 = vld [vmem:[%s1118_s0 + $0xc0] sm:$0xff]  ;;  %v55_v46 = vld [vmem:[%s1118_s0 + $0xc8] sm:$0xff] }
  0x11   :  { %v65_v47 = vpack.c.bf16 %v37_v44, %v36_v43  ;;  %v74_v48 = vpack.c.bf16 %v55_v46, %v54_v45  ;;  %v84_v49 = vld [vmem:[%s1119_s1 + $0x30] sm:$0xff]  ;;  %v85_v50 = vld [vmem:[%s1119_s1 + $0x38] sm:$0xff]  ;;  %v38_v55 = vld [vmem:[%s1118_s0 + $0x40] sm:$0xff] }
  0x12   :  { %v104_v51 = vld [vmem:[%s1119_s1 + $0xd0] sm:$0xff]  ;;  %v105_v52 = vld [vmem:[%s1119_s1 + $0xd8] sm:$0xff]  ;;  %v113_v53 = vpack.c.bf16 %v85_v50, %v84_v49  ;;  %v39_v56 = vld [vmem:[%s1118_s0 + $0x48] sm:$0xff] }
  0x13   :  { %v123_v54 = vpack.c.bf16 %v105_v52, %v104_v51  ;;  %v56_v57 = vld [vmem:[%s1118_s0 + $0xd0] sm:$0xff]  ;;  %v57_v58 = vld [vmem:[%s1118_s0 + $0xd8] sm:$0xff]  ;;  %v66_v59 = vpack.c.bf16 %v39_v56, %v38_v55  ;;  %v86_v61 = vld [vmem:[%s1119_s1 + $0x40] sm:$0xff] }
  0x14   :  { %v75_v60 = vpack.c.bf16 %v57_v58, %v56_v57  ;;  %v87_v62 = vld [vmem:[%s1119_s1 + $0x48] sm:$0xff]  ;;  %v106_v63 = vld [vmem:[%s1119_s1 + $0xe0] sm:$0xff]  ;;  %v40_v3 = vld [vmem:[%s1118_s0 + $0x50] sm:$0xff] }
  0x15   :  { %v107_v0 = vld [vmem:[%s1119_s1 + $0xe8] sm:$0xff]  ;;  %v114_v1 = vpack.c.bf16 %v87_v62, %v86_v61  ;;  %v41_v4 = vld [vmem:[%s1118_s0 + $0x58] sm:$0xff]  ;;  %v58_v5 = vld [vmem:[%s1118_s0 + $0xe0] sm:$0xff] }
  0x16   :  { %v124_v2 = vpack.c.bf16 %v107_v0, %v106_v63  ;;  %v59_v6 = vld [vmem:[%s1118_s0 + $0xe8] sm:$0xff]  ;;  %v67_v7 = vpack.c.bf16 %v41_v4, %v40_v3  ;;  %v88_v9 = vld [vmem:[%s1119_s1 + $0x50] sm:$0xff]  ;;  %v89_v10 = vld [vmem:[%s1119_s1 + $0x58] sm:$0xff] }
  0x17   :  { %686 = vmatmul.msk.bf16.gmra.mxu1 %vm288_vm1, %v63_v23  ;;  %695 = vmatmul.msk.bf16.gmra.mxu3 %vm288_vm1, %v72_v24  ;;  %v76_v8 = vpack.c.bf16 %v59_v6, %v58_v5  ;;  %v108_v11 = vld [vmem:[%s1119_s1 + $0xf0] sm:$0xff]  ;;  %v109_v12 = vld [vmem:[%s1119_s1 + $0xf8] sm:$0xff]  ;;  %v115_v13 = vpack.c.bf16 %v89_v10, %v88_v9  ;;  %v42_v15 = vld [vmem:[%s1118_s0 + $0x60] sm:$0xff] }
  0x18   :  { %v125_v14 = vpack.c.bf16 %v109_v12, %v108_v11  ;;  %v43_v16 = vld [vmem:[%s1118_s0 + $0x68] sm:$0xff]  ;;  %v60_v17 = vld [vmem:[%s1118_s0 + $0xf0] sm:$0xff]  ;;  %v61_v18 = vld [vmem:[%s1118_s0 + $0xf8] sm:$0xff] }
  0x19   :  { %v68_v19 = vpack.c.bf16 %v43_v16, %v42_v15  ;;  %v77_v20 = vpack.c.bf16 %v61_v18, %v60_v17  ;;  %v90_v21 = vld [vmem:[%s1119_s1 + $0x60] sm:$0xff]  ;;  %v91_v22 = vld [vmem:[%s1119_s1 + $0x68] sm:$0xff]  ;;  %v44_v24 = vld [vmem:[%s1118_s0 + $0x70] sm:$0xff] }
  0x1a   :  { %v116_v23 = vpack.c.bf16 %v91_v22, %v90_v21  ;;  %v45_v25 = vld [vmem:[%s1118_s0 + $0x78] sm:$0xff]  ;;  %v92_v27 = vld [vmem:[%s1119_s1 + $0x70] sm:$0xff]  ;;  %v47_v31 = vld [vmem:[%s1118_s0 + $0x88] sm:$0xff] }
  0x1b   :  { %v69_v26 = vpack.c.bf16 %v45_v25, %v44_v24  ;;  %v93_v28 = vld [vmem:[%s1119_s1 + $0x78] sm:$0xff]  ;;  %v94_v34 = vld [vmem:[%s1119_s1 + $0x80] sm:$0xff]  ;;  %v96_v49 = vld [vmem:[%s1119_s1 + $0x90] sm:$0xff] }
  0x1c   :  { %v97_v50 = vld [vmem:[%s1119_s1 + $0x98] sm:$0xff] }
  0x1d   :  { %v119_v56 = vpack.c.bf16 %v97_v50, %v96_v49 }
  0x20   :  { %666 = vmatmul.msk.bf16.gmra.mxu0 %vm140_vm2, %v111_v29  ;;  %676 = vmatmul.msk.bf16.gmra.mxu2 %vm140_vm2, %v121_v30  ;;  %v117_v29 = vpack.c.bf16 %v93_v28, %v92_v27  ;;  %v46_v30 = vld [vmem:[%s1118_s0 + $0x80] sm:$0xff] }
  0x21   :  { %v70_v32 = vpack.c.bf16 %v47_v31, %v46_v30 }
  0x27   :  { %687 = vmatmul.msk.bf16.gmra.mxu1 %vm288_vm1, %v64_v35  ;;  %696 = vmatmul.msk.bf16.gmra.mxu3 %vm288_vm1, %v73_v36  ;;  %v95_v35 = vld [vmem:[%s1119_s1 + $0x88] sm:$0xff] }
  0x28   :  { %v118_v37 = vpack.c.bf16 %v95_v35, %v94_v34 }
  0x30   :  { %667 = vmatmul.msk.bf16.gmra.mxu0 %vm140_vm2, %v112_v41  ;;  %677 = vmatmul.msk.bf16.gmra.mxu2 %vm140_vm2, %v122_v42  ;;  %v1022_v41 = vld [vmem:[%s1122_s4] ss:$0 sm:$0xff] }
  0x37   :  { %688 = vmatmul.msk.bf16.gmra.mxu1 %vm288_vm1, %v65_v47  ;;  %697 = vmatmul.msk.bf16.gmra.mxu3 %vm288_vm1, %v74_v48 }
  0x40   :  { %668 = vmatmul.msk.bf16.gmra.mxu0 %vm140_vm2, %v113_v53  ;;  %678 = vmatmul.msk.bf16.gmra.mxu2 %vm140_vm2, %v123_v54 }
  0x47   :  { %689 = vmatmul.msk.bf16.gmra.mxu1 %vm288_vm1, %v66_v59  ;;  %698 = vmatmul.msk.bf16.gmra.mxu3 %vm288_vm1, %v75_v60 }
  0x50   :  { %669 = vmatmul.msk.bf16.gmra.mxu0 %vm140_vm2, %v114_v1  ;;  %679 = vmatmul.msk.bf16.gmra.mxu2 %vm140_vm2, %v124_v2 }
  0x57   :  { %690 = vmatmul.msk.bf16.gmra.mxu1 %vm288_vm1, %v67_v7  ;;  %699 = vmatmul.msk.bf16.gmra.mxu3 %vm288_vm1, %v76_v8 }
  0x60   :  { %670 = vmatmul.msk.bf16.gmra.mxu0 %vm140_vm2, %v115_v13  ;;  %680 = vmatmul.msk.bf16.gmra.mxu2 %vm140_vm2, %v125_v14 }
  0x67   :  { %691 = vmatmul.msk.bf16.gmra.mxu1 %vm288_vm1, %v68_v19  ;;  %700 = vmatmul.msk.bf16.gmra.mxu3 %vm288_vm1, %v77_v20 }
  0x70   :  { %671 = vmatmul.msk.bf16.gmra.mxu0 %vm140_vm2, %v116_v23 }
  0x77   :  { %692 = vmatmul.msk.bf16.gmra.mxu1 %vm288_vm1, %v69_v26 }
  0x80   :  { %672 = vmatmul.msk.bf16.gmra.mxu0 %vm140_vm2, %v117_v29 }
  0x84   :  { %v346_v33 = vpop.f32.mrf.mxu1 }
  0x87   :  { %693 = vmatmul.msk.bf16.gmra.mxu1 %vm288_vm1, %v70_v32 }
  0x8a   :  { %v1016_v36 = vpop.f32.mrf.mxu3 }
  0x8c   :  { %v348_v39 = vpop.f32.mrf.mxu1 }
  0x8d   :  { %v202_v38 = vpop.f32.mrf.mxu0 }
  0x8e   :  { %v347_v40 = vadd.f32 %v346_v33, %v202_v38 }
  0x90   :  { %673 = vmatmul.msk.bf16.gmra.mxu0 %vm140_vm2, %v118_v37  ;;  %v430_v46 = vadd.f32 %v1022_v41, %v347_v40 }
  0x92   :  { %v1024_v43 = vpop.f32.mrf.mxu3  ;;  %v462_v51 = vmax.f32 %v430_v46, 0.0 }
  0x93   :  { %v252_v42 = vpop.f32.mrf.mxu2 }
  0x94   :  { %v351_v45 = vpop.f32.mrf.mxu1 }
  0x95   :  { %v204_v44 = vpop.f32.mrf.mxu0 }
  0x96   :  { %v349_v47 = vadd.f32 %v348_v39, %v204_v44 }
  0x98   :  { %v431_v48 = vadd.f32 %v1022_v41, %v349_v47 }
  0x9a   :  { %v463_v52 = vmax.f32 %v431_v48, 0.0  ;;  %v396_v54 = vpop.f32.mrf.mxu3 }
  0x9b   :  { %v254_v53 = vpop.f32.mrf.mxu2  ;;  %v397_v55 = vadd.f32 %v396_v54, %v252_v42 }
  0x9c   :  { %v1034_v57 = vpack.c.bf16 %v463_v52, %v462_v51  ;;  %v353_v59 = vpop.f32.mrf.mxu1 }
  0x9d   :  { %v207_v58 = vpop.f32.mrf.mxu0  ;;  %v450_v61 = vadd.f32 %v1022_v41, %v397_v55 }
  0x9e   :  { %v352_v60 = vadd.f32 %v351_v45, %v207_v58 }
  0x9f   :  { %v482_v3 = vmax.f32 %v450_v61, 0.0 }
  0xa0   :  { %674 = vmatmul.msk.bf16.gmra.mxu0 %vm140_vm2, %v119_v56  ;;  %v432_v4 = vadd.f32 %v1022_v41, %v352_v60 }
  0xa2   :  { %v398_v63 = vpop.f32.mrf.mxu3  ;;  %v464_v9 = vmax.f32 %v432_v4, 0.0 }
  0xa3   :  { %v257_v62 = vpop.f32.mrf.mxu2  ;;  %v399_v0 = vadd.f32 %v398_v63, %v254_v53 }
  0xa4   :  { %v356_v2 = vpop.f32.mrf.mxu1 }
  0xa5   :  { %v209_v1 = vpop.f32.mrf.mxu0  ;;  %v451_v5 = vadd.f32 %v1022_v41, %v399_v0 }
  0xa6   :  { %v354_v6 = vadd.f32 %v353_v59, %v209_v1 }
  0xa7   :  { %v483_v7 = vmax.f32 %v451_v5, 0.0 }
  0xa8   :  { %v433_v8 = vadd.f32 %v1022_v41, %v354_v6 }
  0xa9   :  { %v1041_v11 = vpack.c.bf16 %v483_v7, %v482_v3 }
  0xaa   :  { %v465_v10 = vmax.f32 %v433_v8, 0.0  ;;  %v401_v13 = vpop.f32.mrf.mxu3 }
  0xab   :  { %v259_v12 = vpop.f32.mrf.mxu2  ;;  %v402_v14 = vadd.f32 %v401_v13, %v257_v62 }
  0xac   :  { %v1043_v15 = vpack.c.bf16 %v465_v10, %v464_v9  ;;  %v358_v17 = vpop.f32.mrf.mxu1 }
  0xad   :  { %v212_v16 = vpop.f32.mrf.mxu0  ;;  %v452_v19 = vadd.f32 %v1022_v41, %v402_v14 }
  0xae   :  { %v357_v18 = vadd.f32 %v356_v2, %v212_v16 }
  0xaf   :  { %v484_v25 = vmax.f32 %v452_v19, 0.0 }
  0xb0   :  { %v434_v26 = vadd.f32 %v1022_v41, %v357_v18 }
  0xb2   :  { %v403_v21 = vpop.f32.mrf.mxu3  ;;  %v466_v31 = vmax.f32 %v434_v26, 0.0 }
  0xb3   :  { %v262_v20 = vpop.f32.mrf.mxu2  ;;  %v404_v22 = vadd.f32 %v403_v21, %v259_v12 }
  0xb4   :  { %v361_v24 = vpop.f32.mrf.mxu1 }
  0xb5   :  { %v214_v23 = vpop.f32.mrf.mxu0  ;;  %v453_v27 = vadd.f32 %v1022_v41, %v404_v22 }
  0xb6   :  { %v359_v28 = vadd.f32 %v358_v17, %v214_v23 }
  0xb7   :  { %v485_v29 = vmax.f32 %v453_v27, 0.0 }
  0xb8   :  { %v435_v30 = vadd.f32 %v1022_v41, %v359_v28 }
  0xb9   :  { %v1049_v33 = vpack.c.bf16 %v485_v29, %v484_v25 }
  0xba   :  { %v467_v32 = vmax.f32 %v435_v30, 0.0  ;;  %v406_v35 = vpop.f32.mrf.mxu3 }
  0xbb   :  { %v264_v34 = vpop.f32.mrf.mxu2  ;;  %v407_v37 = vadd.f32 %v406_v35, %v262_v20 }
  0xbc   :  { %v1051_v38 = vpack.c.bf16 %v467_v32, %v466_v31  ;;  %v363_v40 = vpop.f32.mrf.mxu1 }
  0xbd   :  { %v217_v39 = vpop.f32.mrf.mxu0  ;;  %v454_v44 = vadd.f32 %v1022_v41, %v407_v37 }
  0xbe   :  { %v362_v42 = vadd.f32 %v361_v24, %v217_v39 }
  0xbf   :  { %v486_v50 = vmax.f32 %v454_v44, 0.0 }
  0xc0   :  { %v436_v51 = vadd.f32 %v1022_v41, %v362_v42 }
  0xc2   :  { %v408_v46 = vpop.f32.mrf.mxu3  ;;  %v468_v56 = vmax.f32 %v436_v51, 0.0 }
  0xc3   :  { %v267_v45 = vpop.f32.mrf.mxu2  ;;  %v409_v47 = vadd.f32 %v408_v46, %v264_v34 }
  0xc4   :  { %v366_v49 = vpop.f32.mrf.mxu1 }
  0xc5   :  { %v219_v48 = vpop.f32.mrf.mxu0  ;;  %v455_v52 = vadd.f32 %v1022_v41, %v409_v47 }
  0xc6   :  { %v364_v53 = vadd.f32 %v363_v40, %v219_v48 }
  0xc7   :  { %v487_v54 = vmax.f32 %v455_v52, 0.0 }
  0xc8   :  { %v437_v55 = vadd.f32 %v1022_v41, %v364_v53 }
  0xc9   :  { %v1057_v59 = vpack.c.bf16 %v487_v54, %v486_v50 }
  0xca   :  { %v469_v58 = vmax.f32 %v437_v55, 0.0  ;;  %v411_v61 = vpop.f32.mrf.mxu3 }
  0xcb   :  { %v269_v60 = vpop.f32.mrf.mxu2  ;;  %v412_v44 = vadd.f32 %v411_v61, %v267_v45 }
  0xcc   :  { %v1059_v62 = vpack.c.bf16 %v469_v58, %v468_v56  ;;  %v368_v0 = vpop.f32.mrf.mxu1 }
  0xcd   :  { %v222_v63 = vpop.f32.mrf.mxu0  ;;  %v456_v52 = vadd.f32 %v1022_v41, %v412_v44 }
  0xce   :  { %v367_v1 = vadd.f32 %v366_v49, %v222_v63 }
  0xcf   :  { %v488_v56 = vmax.f32 %v456_v52, 0.0  ;;  %v525_v52 = vsel %vm511_vm3, %v1059_v62, 0  ;;  %v519_v62 = vsel %vm511_vm3, %v1043_v15, 0 }
  0xd0   :  { %v438_v6 = vadd.f32 %v1022_v41, %v367_v1 }
  0xd2   :  { %v413_v3 = vpop.f32.mrf.mxu3  ;;  %v470_v9 = vmax.f32 %v438_v6, 0.0 }
  0xd3   :  { %v272_v2 = vpop.f32.mrf.mxu2  ;;  %v414_v47 = vadd.f32 %v413_v3, %v269_v60 }
  0xd4   :  { %v1061_v5 = vpop.f32.mrf.mxu1 }
  0xd5   :  { %v224_v4 = vpop.f32.mrf.mxu0  ;;  %v457_v53 = vadd.f32 %v1022_v41, %v414_v47 }
  0xd6   :  { %v369_v7 = vadd.f32 %v368_v0, %v224_v4 }
  0xd7   :  { %v489_v58 = vmax.f32 %v457_v53, 0.0 }
  0xd8   :  { %v439_v8 = vadd.f32 %v1022_v41, %v369_v7 }
  0xd9   :  { %v508_v4 = vpack.c.bf16 %v489_v58, %v488_v56  ;;  %v494_v56 = vld [vmem:[%s1123_s5] sm:$0xf]  ;;  %v516_v58 = vsel %vm511_vm3, %v1034_v57, 0  ;;  %s747_s5 = smov [#allocation3]  }
  0xda   :  { %v471_v10 = vmax.f32 %v439_v8, 0.0  ;;  %v416_v12 = vpop.f32.mrf.mxu3  ;;  %s650_s8 = sshll.u32 %s747_s5, 4  ;;  %s651_s8 = int_to_ptr.vmem [resolvable:$true] %s650_s8 }
  0xdb   :  { %v274_v13 = vpop.f32.mrf.mxu2  ;;  %v417_v29 = vadd.f32 %v416_v12, %v272_v2 }
  0xdc   :  { %v1065_v14 = vpack.c.bf16 %v471_v10, %v470_v9  ;;  %v373_v17 = vpop.f32.mrf.mxu1  ;;  %v555_v10 = vsel %vm511_vm3, %v508_v4, 0 }
  0xdd   :  { %v227_v16 = vpop.f32.mrf.mxu0  ;;  %v458_v37 = vadd.f32 %v1022_v41, %v417_v29 }
  0xdf   :  { %v490_v48 = vmax.f32 %v458_v37, 0.0 }
  0xe2   :  { %v418_v18 = vpop.f32.mrf.mxu3 }
  0xe3   :  { %v277_v20 = vpop.f32.mrf.mxu2  ;;  %v419_v30 = vadd.f32 %v418_v18, %v274_v13 }
  0xe4   :  { %v376_v21 = vpop.f32.mrf.mxu1 }
  0xe5   :  { %v229_v19 = vpop.f32.mrf.mxu0  ;;  %v459_v39 = vadd.f32 %v1022_v41, %v419_v30 }
  0xe6   :  { %v374_v18 = vadd.f32 %v373_v17, %v229_v19 }
  0xe7   :  { %v491_v49 = vmax.f32 %v459_v39, 0.0  ;;  %v528_v39 = vsel %vm511_vm3, %v1065_v14, 0 }
  0xe9   :  { %v509_v54 = vpack.c.bf16 %v491_v49, %v490_v48 }
  0xea   :  { %v421_v22 = vpop.f32.mrf.mxu3 }
  0xeb   :  { %v422_v24 = vadd.f32 %v421_v22, %v277_v20  ;;  %v279_v25 = vpop.f32.mrf.mxu2  ;;  %v558_v63 = vsel %vm511_vm3, %v509_v54, 0 }
  0xec   :  { %v378_v26 = vpop.f32.mrf.mxu1 }
  0xed   :  { %v232_v23 = vpop.f32.mrf.mxu0  ;;  %v460_v27 = vadd.f32 %v1022_v41, %v422_v24  ;;  %v441_v24 = vadd.f32 %v1022_v41, %v374_v18 }
  0xee   :  { %v377_v2 = vadd.f32 %v376_v21, %v232_v23  ;;  %v372_v21 = vadd.f32 %v1061_v5, %v227_v16  ;;  %v549_v5 = vsel %vm511_vm3, %v1049_v33, 0 }
  0xef   :  { %v492_v34 = vmax.f32 %v460_v27, 0.0  ;;  %v552_v27 = vsel %vm511_vm3, %v1057_v59, 0  ;;  %v473_v29 = vmax.f32 %v441_v24, 0.0 }
  0xf0   :  { %v442_v9 = vadd.f32 %v1022_v41, %v377_v2 }
  0xf2   :  { %v423_v28 = vpop.f32.mrf.mxu3  ;;  %v474_v23 = vmax.f32 %v442_v9, 0.0 }
  0xf3   :  { %v424_v31 = vadd.f32 %v423_v28, %v279_v25 }
  0xf4   :  { %v381_v46 = vpop.f32.mrf.mxu1 }
  0xf5   :  { %v234_v32 = vpop.f32.mrf.mxu0  ;;  %v461_v35 = vadd.f32 %v1022_v41, %v424_v31 }
  0xf6   :  { %v379_v60 = vadd.f32 %v378_v26, %v234_v32  ;;  %v440_v26 = vadd.f32 %v1022_v41, %v372_v21 }
  0xf7   :  { %v493_v40 = vmax.f32 %v461_v35, 0.0  ;;  %v546_v35 = vsel %vm511_vm3, %v1041_v11, 0 }
  0xf8   :  { %v443_v6 = vadd.f32 %v1022_v41, %v379_v60  ;;  %v472_v19 = vmax.f32 %v440_v26, 0.0 }
  0xf9   :  { %v510_v42 = vpack.c.bf16 %v493_v40, %v492_v34 }
  0xfa   :  { %v475_v20 = vmax.f32 %v443_v6, 0.0  ;;  %v500_v31 = vpack.c.bf16 %v473_v29, %v472_v19  ;;  %v640_v19 = vlaneseq }
  0xfb   :  { %v561_v50 = vsel %vm511_vm3, %v510_v42, 0 }
  0xfc   :  { %576 = vmatpush.bf16.xpose.msrb.mxu3 %v561_v50  ;;  %v383_v45 = vpop.f32.mrf.mxu1  ;;  %v501_v25 = vpack.c.bf16 %v475_v20, %v474_v23  ;;  %v531_v32 = vsel %vm511_vm3, %v500_v31, 0  ;;  %v746_v50 = vmov 0   ;;  %vm642_vm13 = vcmp.lt.s32.totalorder %v640_v19, 256 }
  0xfd   :  { %v237_v51 = vpop.f32.mrf.mxu0  ;;  %710 = vset.pattern.permute.xlu0 %v746_v50 }
  0xfe   :  { %v382_v55 = vadd.f32 %v381_v46, %v237_v51  ;;  %v534_v17 = vsel %vm511_vm3, %v501_v25, 0  ;;  %v589_v51 = vld [vmem:[#allocation2] sm:$0x1] }
  0xff   :  { %592 = vperm.xlu0 %710, %v589_v51  }
 0x100   :  { %v444_v0 = vadd.f32 %v1022_v41, %v382_v55  ;;  %v522_v55 = vsel %vm511_vm3, %v1051_v38, 0 }
 0x102   :  { %v476_v7 = vmax.f32 %v444_v0, 0.0 }
 0x104   :  { %577 = vmatpush.bf16.xpose.msrb.mxu3 %v558_v63  ;;  %v386_v30 = vpop.f32.mrf.mxu1 }
 0x105   :  { %v239_v61 = vpop.f32.mrf.mxu0 }
 0x106   :  { %v384_v1 = vadd.f32 %v383_v45, %v239_v61 }
 0x108   :  { %v445_v3 = vadd.f32 %v1022_v41, %v384_v1 }
 0x10a   :  { %v477_v8 = vmax.f32 %v445_v3, 0.0 }
 0x10c   :  { %v502_v12 = vpack.c.bf16 %v477_v8, %v476_v7  ;;  %578 = vmatpush.bf16.xpose.msrb.mxu3 %v555_v10  ;;  %v388_v59 = vpop.f32.mrf.mxu1 }
 0x10d   :  { %v242_v13 = vpop.f32.mrf.mxu0 }
 0x10e   :  { %v537_v22 = vsel %vm511_vm3, %v502_v12, 0  ;;  %v387_v42 = vadd.f32 %v386_v30, %v242_v13 }
 0x10f   :  { %563 = vmatpush.bf16.xpose.msrb.mxu2 %v537_v22 }
 0x110   :  { %v446_v48 = vadd.f32 %v1022_v41, %v387_v42 }
 0x112   :  { %v478_v14 = vmax.f32 %v446_v48, 0.0 }
 0x114   :  { %579 = vmatpush.bf16.xpose.msrb.mxu3 %v552_v27 }
 0x115   :  { %v244_v28 = vpop.f32.mrf.mxu0 }
 0x116   :  { %v389_v44 = vadd.f32 %v388_v59, %v244_v28 }
 0x117   :  { %564 = vmatpush.bf16.xpose.msrb.mxu2 %v534_v17 }
 0x118   :  { %v447_v11 = vadd.f32 %v1022_v41, %v389_v44 }
 0x11a   :  { %v479_v53 = vmax.f32 %v447_v11, 0.0 }
 0x11c   :  { %580 = vmatpush.bf16.xpose.msrb.mxu3 %v549_v5  ;;  %v503_v54 = vpack.c.bf16 %v479_v53, %v478_v14 }
 0x11d   :  { %v247_v16 = vpop.f32.mrf.mxu0 }
 0x11e   :  { %v392_v34 = vadd.f32 %v1016_v36, %v247_v16 }
 0x11f   :  { %565 = vmatpush.bf16.xpose.msrb.mxu2 %v531_v32 }
 0x120   :  { %v448_v40 = vadd.f32 %v1022_v41, %v392_v34 }
 0x122   :  { %v480_v47 = vmax.f32 %v448_v40, 0.0 }
 0x124   :  { %581 = vmatpush.bf16.xpose.msrb.mxu3 %v546_v35 }
 0x125   :  { %v249_v37 = vpop.f32.mrf.mxu0 }
 0x126   :  { %v394_v33 = vadd.f32 %v1024_v43, %v249_v37 }
 0x127   :  { %566 = vmatpush.bf16.xpose.msrb.mxu2 %v528_v39 }
 0x128   :  { %v449_v46 = vadd.f32 %v1022_v41, %v394_v33  ;;  %v540_v41 = vsel %vm511_vm3, %v503_v54, 0 }
 0x12a   :  { %v481_v36 = vmax.f32 %v449_v46, 0.0 }
 0x12c   :  { %v504_v49 = vpack.c.bf16 %v481_v36, %v480_v47 }
 0x12e   :  { %v543_v43 = vsel %vm511_vm3, %v504_v49, 0 }
 0x12f   :  { %567 = vmatpush.bf16.xpose.msrb.mxu2 %v525_v52  ;;  %582 = vmatpush.bf16.xpose.msrb.mxu3 %v543_v43 }
 0x137   :  { %568 = vmatpush.bf16.xpose.msrb.mxu2 %v522_v55  ;;  %583 = vmatpush.bf16.xpose.msrb.mxu3 %v540_v41 }
 0x13e   :  { %702 = vmatmul.msk.bf16.vlgmr.msrb.gmra.mxu3 %vm511_vm3, %v494_v56 }
 0x13f   :  { %569 = vmatpush.bf16.xpose.msrb.mxu2 %v519_v62 }
 0x147   :  { %570 = vmatpush.bf16.xpose.msrb.mxu2 %v516_v58 }
 0x14e   :  { %701 = vmatmul.msk.bf16.vlgmr.msrb.gmra.mxu2 %vm511_vm3, %v494_v56 }
 0x171   :  { %v593_v38 = vpop.permute.xlu0 %592 }
 0x172   :  { %v595_v63 = vperm.slane %v593_v38, 0 }
 0x1c1   :  { %v585_v45 = vpop.f32.mrf.mxu3 }
 0x1c2   :  { %v597_v61 = vadd.f32 %v595_v63, %v585_v45 }
 0x1c4   :  { %v599_v60 = vsub.f32 0.0, %v597_v61 }
 0x1c6   :  { %v602_v0 = vmul.f32 1.442695, %v599_v60 }
 0x1c8   :  { %712 = vpow2.f32 %v602_v0 }
 0x1c9   :  { %v587_v1 = vpop.f32.mrf.mxu3 }
 0x1ce   :  { %v713_v2 = vpop.eup %712 }
 0x1cf   :  { %v605_v3 = vadd.f32 1.0, %v713_v2 }
 0x1d1   :  { %714 = vrcp.f32 %v605_v3  ;;  %v572_v15 = vpop.f32.mrf.mxu2  ;;  %vm625_vm4 = vweird.f32 %v605_v3  ;;  %v631_v20 = vand.u32 2147483648, %v605_v3  ;;  %v629_v21 = vand.u32 2147483647, %v605_v3 }
 0x1d2   :  { %v596_v4 = vadd.f32 %v595_v63, %v572_v15 }
 0x1d3   :  { %v632_v25 = vor.u32 1.1754944e-38, %v631_v20  ;;  %vm630_vm7 = vcmp.eq.f32.partialorder %v629_v21, 8.507059e+37 }
 0x1d4   :  { %v598_v6 = vsub.f32 0.0, %v596_v4 }
 0x1d6   :  { %v600_v7 = vmul.f32 1.442695, %v598_v6 }
 0x1d7   :  { %v715_v8 = vpop.eup %714 }
 0x1d8   :  { %716 = vpow2.f32 %v600_v7  ;;  %v621_v9 = vmul.f32 %v715_v8, %v605_v3  ;;  %vm626_vm5 = vweird.f32 %v715_v8 }
 0x1d9   :  { %v574_v57 = vpop.f32.mrf.mxu2  ;;  %vm627_vm6 = vmor %vm625_vm4, %vm626_vm5 }
 0x1da   :  { %v622_v12 = vsub.f32 1.0, %v621_v9 }
 0x1dc   :  { %v623_v18 = vmul.f32 %v715_v8, %v622_v12 }
 0x1de   :  { %v717_v10 = vpop.eup %716  ;;  %v624_v22 = vadd.f32 %v715_v8, %v623_v18 }
 0x1df   :  { %v604_v13 = vadd.f32 1.0, %v717_v10 }
 0x1e0   :  { %v628_v27 = vsel %vm627_vm6, %v715_v8, %v624_v22 }
 0x1e1   :  { %718 = vrcp.f32 %v604_v13  ;;  %v617_v28 = vand.u32 2147483648, %v604_v13  ;;  %v615_v17 = vand.u32 2147483647, %v604_v13  ;;  %v633_v30 = vsel %vm630_vm7, %v632_v25, %v628_v27 }
 0x1e2   :  { %vm611_vm9 = vweird.f32 %v604_v13  ;;  %v636_v32 = vrot.slane %v633_v30, 7 }
 0x1e3   :  { %v618_v5 = vor.u32 1.1754944e-38, %v617_v28  ;;  %vm616_vm12 = vcmp.eq.f32.partialorder %v615_v17, 8.507059e+37 }
 0x1e7   :  { %v719_v23 = vpop.eup %718 }
 0x1e8   :  { %v607_v24 = vmul.f32 %v719_v23, %v604_v13  ;;  %vm612_vm8 = vweird.f32 %v719_v23 }
 0x1e9   :  { %vm613_vm10 = vmor %vm611_vm9, %vm612_vm8 }
 0x1ea   :  { %v608_v26 = vsub.f32 1.0, %v607_v24 }
 0x1ec   :  { %v609_v29 = vmul.f32 %v719_v23, %v608_v26 }
 0x1ee   :  { %v610_v31 = vadd.f32 %v719_v23, %v609_v29 }
 0x1f0   :  { %v614_v16 = vsel %vm613_vm10, %v719_v23, %v610_v31 }
 0x1f1   :  { %v619_v34 = vsel %vm616_vm12, %v618_v5, %v614_v16 }
 0x1f2   :  { %v638_v59 = vsel %vm637_vm11, %v619_v34, %v636_v32 }
 0x1f3   :  { %644 = vst.msk [vmem:[#allocation3] sm:$0x3] %vm642_vm13, %v638_v59 }
 0x1f4   :  { %655 = dma.vmem_to_hbm [thread:$0]  %s651_s8, 32, %s653_s11, [#allocation4]  }
 0x1f5   :  { %744 = dma.done.wait [#allocation4], 32  }
 0x1f6   :  { %745 = vsyncadd [#allocation4], 4294967264 }
 0x1f7   :  { %660 = vsyncpa [#allocation4], 1 }

</bundles_post_ra>
